<compile_context>
chip_gen: v6e
topology: v6e:2x2x1
jax: 0.10.0
libtpu: 0.0.40
codegen_flags: <defaults>
</compile_context>

<pallas_src>
import functools

import jax
import jax.numpy as jnp
from jax.experimental import pallas as pl
from jax.experimental.pallas import tpu as pltpu


# ---------------------------------------------------------------------------
# Fused single-pass kernel: whole (C, S) slab resident per batch.
# ---------------------------------------------------------------------------
def _fused_kernel(x_ref, wavg_ref, wmax_ref, bias_ref, o_ref):
    # x_ref/o_ref: (1, C, S); wavg/wmax: (C_out, C_in) f32 (1/S folded into
    # wavg); bias: (C, 1) f32.
    xf = x_ref[...].astype(jnp.float32)                       # (1, C, S)
    s_sum = jnp.sum(xf, axis=2)                                # (1, C) ch on lanes
    s_max = jnp.max(xf, axis=2)                                # (1, C)
    # 1x1x1 conv (2C -> C) as broadcast-multiply + lane reduce (out-ch on sublanes).
    prod = wavg_ref[...] * s_sum + wmax_ref[...] * s_max       # (C, C)
    logits = jnp.sum(prod, axis=1, keepdims=True) + bias_ref[...]   # (C, 1)
    att = 1.0 / (1.0 + jnp.exp(-logits))                       # sigmoid, f32
    o_ref[...] = (xf * att[None, :, :]).astype(o_ref.dtype)


# ---------------------------------------------------------------------------
# Two-pass fallback kernels (rows = flattened (N, C), lanes = spatial).
# ---------------------------------------------------------------------------
def _pool_kernel(x_ref, sum_ref, max_ref, *, s_tile, s_valid, needs_mask):
    # x_ref: (r_tile, s_tile); sum_ref/max_ref: (r_tile, 1) f32 accumulators.
    s_idx = pl.program_id(1)

    @pl.when(s_idx == 0)
    def _():
        sum_ref[...] = jnp.zeros_like(sum_ref)
        max_ref[...] = jnp.full_like(max_ref, -jnp.inf)

    x = x_ref[...].astype(jnp.float32)

    def _accum(xs, xm):
        sum_ref[...] += jnp.sum(xs, axis=1, keepdims=True)
        max_ref[...] = jnp.maximum(max_ref[...],
                                   jnp.max(xm, axis=1, keepdims=True))

    if needs_mask:
        last = pl.num_programs(1) - 1

        @pl.when(s_idx < last)                 # full tiles: no mask work
        def _():
            _accum(x, x)

        @pl.when(s_idx == last)                # ragged tail: mask pad lanes
        def _():
            lane = jax.lax.broadcasted_iota(jnp.int32, x.shape, 1)
            valid = (s_idx * s_tile + lane) < s_valid
            _accum(jnp.where(valid, x, 0.0), jnp.where(valid, x, -jnp.inf))
    else:
        _accum(x, x)


def _scale_kernel(att_ref, x_ref, o_ref):
    # att_ref: (r_tile, 1); x_ref/o_ref: (r_tile, s_tile).
    o_ref[...] = x_ref[...] * att_ref[...]


def _choose_tiles(R, S, itemsize, block_bytes):
    """Byte-budgeted (r_tile, s_tile): r_tile multiple of the sublane pack (or
    full R), s_tile multiple of 128 (or full S when S < 128)."""
    LANE = 128
    sub = max(8, 32 // itemsize)               # 8 f32, 16 bf16, 32 int8
    if S < LANE:
        s_tile = S                             # full-dim block (always legal)
    else:
        max_lanes = max(LANE, (block_bytes // (sub * itemsize)) // LANE * LANE)
        s_tile = min((S // LANE) * LANE, max_lanes)
    r_budget = max(1, block_bytes // (s_tile * itemsize))
    if r_budget >= R:
        r_tile = R
    else:
        r_tile = min(max(sub, (r_budget // sub) * sub), R)
    # Give the (parallel) row axis >= 2 blocks when possible so v7x megacore
    # can split the reduction pass across both TensorCores.
    if r_tile >= R and R >= 2 * sub:
        half = -(-((R + 1) // 2) // sub) * sub
        if half < R:
            r_tile = half
    return r_tile, s_tile


def spatial_attention(x_ncdhw, weight, bias, *,
                      block_bytes=2 << 20,
                      fused_slab_limit_bytes=2 << 20):
    """x_ncdhw: (N, C, D, H, W); weight: (C, 2C) squeezed 1x1x1 Conv3d; bias: (C,)."""
    N, C, D, H, W = x_ncdhw.shape
    S = D * H * W
    dtype = x_ncdhw.dtype
    itemsize = jnp.dtype(dtype).itemsize

    w = weight.astype(jnp.float32)             # (C, 2C)
    b = bias.astype(jnp.float32)

    # ------------- fused path: per-batch slab fits the VMEM budget ----------
    if C * S * 4 <= fused_slab_limit_bytes:
        x3 = x_ncdhw.reshape(N, C, S)
        w_avg = w[:, :C] * (1.0 / S)           # (C_out, C_in), 1/S folded in
        w_max = w[:, C:]
        bias_col = b.reshape(C, 1)
        out = pl.pallas_call(
            _fused_kernel,
            out_shape=jax.ShapeDtypeStruct((N, C, S), dtype),
            grid_spec=pltpu.PrefetchScalarGridSpec(
                num_scalar_prefetch=0,
                grid=(N,),
                in_specs=[pl.BlockSpec((1, C, S), lambda n: (n, 0, 0)),
                          pl.BlockSpec((C, C), lambda n: (0, 0)),
                          pl.BlockSpec((C, C), lambda n: (0, 0)),
                          pl.BlockSpec((C, 1), lambda n: (0, 0))],
                out_specs=pl.BlockSpec((1, C, S), lambda n: (n, 0, 0)),
            ),
            compiler_params=pltpu.CompilerParams(
                dimension_semantics=("parallel",)),
            cost_estimate=pl.CostEstimate(
                flops=3 * N * C * S + 4 * N * C * C,
                transcendentals=N * C,
                bytes_accessed=2 * N * C * S * itemsize),
        )(x3, w_avg, w_max, bias_col)
        return out.reshape(N, C, D, H, W)

    # ------------- two-pass fallback for large S ----------------------------
    R = N * C
    x2 = x_ncdhw.reshape(R, S)                 # free reshape, rows contiguous
    r_tile, s_tile = _choose_tiles(R, S, itemsize, block_bytes)
    n_r = pl.cdiv(R, r_tile)
    n_s = pl.cdiv(S, s_tile)
    needs_mask = (S % s_tile) != 0

    # pass 1: per-row spatial sum & max (f32 accumulators, init via pl.when)
    pool_sum, pool_max = pl.pallas_call(
        functools.partial(_pool_kernel, s_tile=s_tile, s_valid=S,
                          needs_mask=needs_mask),
        out_shape=(jax.ShapeDtypeStruct((R, 1), jnp.float32),
                   jax.ShapeDtypeStruct((R, 1), jnp.float32)),
        grid_spec=pltpu.PrefetchScalarGridSpec(
            num_scalar_prefetch=0,
            grid=(n_r, n_s),
            in_specs=[pl.BlockSpec((r_tile, s_tile), lambda r, s: (r, s))],
            out_specs=(pl.BlockSpec((r_tile, 1), lambda r, s: (r, 0)),
                       pl.BlockSpec((r_tile, 1), lambda r, s: (r, 0))),
        ),
        compiler_params=pltpu.CompilerParams(
            dimension_semantics=("parallel", "arbitrary")),
        cost_estimate=pl.CostEstimate(
            flops=2 * R * S,
            transcendentals=0,
            bytes_accessed=R * S * itemsize + 2 * R * 4),
    )(x2)

    # tiny 2C -> C conv + sigmoid, hoisted to plain JAX (1/S folded into w_avg)
    sums = pool_sum.reshape(N, C)
    maxs = pool_max.reshape(N, C)
    w_avg = w[:, :C].T * (1.0 / S)             # (C_in, C_out)
    w_max = w[:, C:].T
    logits = sums @ w_avg + maxs @ w_max + b[None, :]
    att = jax.nn.sigmoid(logits).astype(dtype).reshape(R, 1)

    # pass 2: broadcast-scale every row by its attention value
    out = pl.pallas_call(
        _scale_kernel,
        out_shape=jax.ShapeDtypeStruct((R, S), dtype),
        grid_spec=pltpu.PrefetchScalarGridSpec(
            num_scalar_prefetch=0,
            grid=(n_r, n_s),
            in_specs=[pl.BlockSpec((r_tile, 1), lambda r, s: (r, 0)),
                      pl.BlockSpec((r_tile, s_tile), lambda r, s: (r, s))],
            out_specs=pl.BlockSpec((r_tile, s_tile), lambda r, s: (r, s)),
        ),
        compiler_params=pltpu.CompilerParams(
            dimension_semantics=("parallel", "parallel")),
        cost_estimate=pl.CostEstimate(
            flops=R * S,
            transcendentals=0,
            bytes_accessed=2 * R * S * itemsize + R * itemsize),
    )(att, x2)

    return out.reshape(N, C, D, H, W)


def reference(x, weight, bias):
    # Pure-JAX reference of the PyTorch forward.
    avg = jnp.mean(x, axis=(2, 3, 4))                       # (N, C)
    mx = jnp.max(x, axis=(2, 3, 4))                         # (N, C)
    pooled = jnp.concatenate([avg, mx], axis=1)             # (N, 2C)
    att = jax.nn.sigmoid(pooled @ weight.T + bias)          # (N, C)
    return x * att[:, :, None, None, None]


if __name__ == "__main__":
    key = jax.random.PRNGKey(0)

    def make_case(k, N, C, D, H, W):
        k_x, k_w, k_b = jax.random.split(k, 3)
        x = jax.random.normal(k_x, (N, C, D, H, W), dtype=jnp.float32)
        bound = 1.0 / ((2 * C) ** 0.5)
        weight = jax.random.uniform(k_w, (C, 2 * C), jnp.float32, -bound, bound)
        bias = jax.random.uniform(k_b, (C,), jnp.float32, -bound, bound)
        return x, weight, bias

    cases = [
        # canonical small demo: batch=2, channels=4, spatial 4x8x8 (fused path)
        ((2, 4, 4, 8, 8), {}),
        # ragged S, forced two-pass path (exercises last-tile masking)
        ((2, 4, 3, 5, 9), dict(fused_slab_limit_bytes=0, block_bytes=8192)),
        # ragged R and S, multi-tile accumulation, forced two-pass path
        ((3, 5, 2, 7, 10), dict(fused_slab_limit_bytes=0, block_bytes=4096)),
    ]

    keys = jax.random.split(key, len(cases))
    for k, (shape, kwargs) in zip(keys, cases):
        x, weight, bias = make_case(k, *shape)
        out = jax.block_until_ready(spatial_attention(x, weight, bias, **kwargs))
        ref = reference(x, weight, bias)
        assert out.shape == x.shape, f"shape mismatch for {shape}"
        assert out.dtype == x.dtype, f"dtype mismatch for {shape}"
        assert jnp.allclose(out, ref, atol=1e-5, rtol=1e-4), f"mismatch for {shape}"

    print("KERNEL_OK")
</pallas_src>

<mosaic_0001>
module attributes {stable_mosaic.version = 11 : i64} {
  func.func @_fused_kernel(%arg0: i32, %arg1: memref<1x4x256xf32, #tpu.memory_space<vmem>>, %arg2: memref<4x4xf32, #tpu.memory_space<vmem>>, %arg3: memref<4x4xf32, #tpu.memory_space<vmem>>, %arg4: memref<4x1xf32, #tpu.memory_space<vmem>>, %arg5: memref<1x4x256xf32, #tpu.memory_space<vmem>>) attributes {dimension_semantics = [#tpu.dimension_semantics<parallel>], iteration_bounds = array<i64: 2>, scalar_prefetch = 0 : i64, scratch_operands = 0 : i64, tpu.core_type = #tpu.core_type<tc>, window_params = [{transform_indices = @transform_0, window_bounds = array<i64: 1, 4, 256>}, {pipeline_mode = #tpu.pipeline_mode<synchronous>, transform_indices = @transform_1, window_bounds = array<i64: 4, 4>}, {pipeline_mode = #tpu.pipeline_mode<synchronous>, transform_indices = @transform_2, window_bounds = array<i64: 4, 4>}, {pipeline_mode = #tpu.pipeline_mode<synchronous>, transform_indices = @transform_3, window_bounds = array<i64: 4, 1>}, {transform_indices = @transform_4, window_bounds = array<i64: 1, 4, 256>}]} {
    %c0 = arith.constant 0 : index
    %c0_0 = arith.constant 0 : index
    %c0_1 = arith.constant 0 : index
    %0 = vector.load %arg1[%c0, %c0_0, %c0_1] : memref<1x4x256xf32, #tpu.memory_space<vmem>>, vector<1x4x256xf32>
    %cst = arith.constant dense<0.000000e+00> : vector<1x4xf32>
    %1 = vector.multi_reduction <add>, %0, %cst [2] : vector<1x4x256xf32> to vector<1x4xf32>
    %cst_2 = arith.constant dense<0xFF800000> : vector<1x4xf32>
    %2 = vector.multi_reduction <maximumf>, %0, %cst_2 [2] : vector<1x4x256xf32> to vector<1x4xf32>
    %c0_3 = arith.constant 0 : index
    %c0_4 = arith.constant 0 : index
    %3 = vector.load %arg2[%c0_3, %c0_4] : memref<4x4xf32, #tpu.memory_space<vmem>>, vector<4x4xf32>
    %4 = vector.broadcast %1 : vector<1x4xf32> to vector<4x4xf32>
    %5 = arith.mulf %3, %4 : vector<4x4xf32>
    %c0_5 = arith.constant 0 : index
    %c0_6 = arith.constant 0 : index
    %6 = vector.load %arg3[%c0_5, %c0_6] : memref<4x4xf32, #tpu.memory_space<vmem>>, vector<4x4xf32>
    %7 = vector.broadcast %2 : vector<1x4xf32> to vector<4x4xf32>
    %8 = arith.mulf %6, %7 : vector<4x4xf32>
    %9 = arith.addf %5, %8 : vector<4x4xf32>
    %cst_7 = arith.constant dense<0.000000e+00> : vector<4xf32>
    %10 = vector.multi_reduction <add>, %9, %cst_7 [1] : vector<4x4xf32> to vector<4xf32>
    %11 = vector.shape_cast %10 : vector<4xf32> to vector<4x1xf32>
    %c0_8 = arith.constant 0 : index
    %c0_9 = arith.constant 0 : index
    %12 = vector.load %arg4[%c0_8, %c0_9] : memref<4x1xf32, #tpu.memory_space<vmem>>, vector<4x1xf32>
    %13 = arith.addf %11, %12 : vector<4x1xf32>
    %cst_10 = arith.constant 0.000000e+00 : f32
    %14 = vector.broadcast %cst_10 : f32 to vector<4x1xf32>
    %15 = arith.subf %14, %13 : vector<4x1xf32>
    %16 = math.exp %15 : vector<4x1xf32>
    %cst_11 = arith.constant 1.000000e+00 : f32
    %17 = vector.broadcast %cst_11 : f32 to vector<4x1xf32>
    %18 = arith.addf %17, %16 : vector<4x1xf32>
    %cst_12 = arith.constant 1.000000e+00 : f32
    %19 = vector.broadcast %cst_12 : f32 to vector<4x1xf32>
    %20 = arith.divf %19, %18 : vector<4x1xf32>
    %21 = vector.shape_cast %20 : vector<4x1xf32> to vector<1x4x1xf32>
    %22 = vector.broadcast %21 : vector<1x4x1xf32> to vector<1x4x256xf32>
    %23 = arith.mulf %0, %22 : vector<1x4x256xf32>
    %c0_13 = arith.constant 0 : index
    %c0_14 = arith.constant 0 : index
    %c0_15 = arith.constant 0 : index
    %24 = vector.load %arg5[%c0_13, %c0_14, %c0_15] : memref<1x4x256xf32, #tpu.memory_space<vmem>>, vector<1x4x256xf32>
    tpu.vector_store %arg5[%c0_13, %c0_14, %c0_15], %23 {strides = array<i32>} : memref<1x4x256xf32, #tpu.memory_space<vmem>>, vector<1x4x256xf32>,
    return
  }
  func.func @transform_0(%arg0: i32) -> (i32, i32, i32) {
    %c0_i32 = arith.constant 0 : i32
    %c0_i32_0 = arith.constant 0 : i32
    %c0_i32_1 = arith.constant 0 : i32
    return %arg0, %c0_i32, %c0_i32_0 : i32, i32, i32
  }
  func.func @transform_1(%arg0: i32) -> (i32, i32) {
    %c0_i32 = arith.constant 0 : i32
    %c0_i32_0 = arith.constant 0 : i32
    %c0_i32_1 = arith.constant 0 : i32
    return %c0_i32, %c0_i32_0 : i32, i32
  }
  func.func @transform_2(%arg0: i32) -> (i32, i32) {
    %c0_i32 = arith.constant 0 : i32
    %c0_i32_0 = arith.constant 0 : i32
    %c0_i32_1 = arith.constant 0 : i32
    return %c0_i32, %c0_i32_0 : i32, i32
  }
  func.func @transform_3(%arg0: i32) -> (i32, i32) {
    %c0_i32 = arith.constant 0 : i32
    %c0_i32_0 = arith.constant 0 : i32
    %c0_i32_1 = arith.constant 0 : i32
    return %c0_i32, %c0_i32_0 : i32, i32
  }
  func.func @transform_4(%arg0: i32) -> (i32, i32, i32) {
    %c0_i32 = arith.constant 0 : i32
    %c0_i32_0 = arith.constant 0 : i32
    %c0_i32_1 = arith.constant 0 : i32
    return %arg0, %c0_i32, %c0_i32_0 : i32, i32, i32
  }
}

</mosaic_0001>

<bundles_post_ra>
// kernel: tpu_custom_call.1
= control target key start
LH: loop header
LB: loop body
LE: loop exit
PB: predicated region body
PF: predicated region fallthrough
CT: control target
= control target key end

     0   :  { %9 = vsyncpa [#allocation3], 0  ;;  %s713_s0 = inlined_call_operand.hbm [shape: f32[2,4,256], index: 0, kind: input, shape index: {}]   ;;  %s714_s1 = inlined_call_operand.vmem [shape: f32[4,4], index: 1, kind: input, shape index: {}]   ;;  %s715_s2 = inlined_call_operand.vmem [shape: f32[4,4], index: 2, kind: input, shape index: {}]   ;;  %s716_s3 = inlined_call_operand.vmem [shape: f32[4,1], index: 3, kind: input, shape index: {}]   ;;  %s717_s4 = inlined_call_operand.hbm [shape: f32[2,4,256], index: 4, kind: output, shape index: {}]  }
   0x1   :  { %11 = vsyncpa [#allocation3 + $0x1], 0 }
   0x2   :  { %12 = vsyncpa [#allocation4], 0 }
   0x3   :  { %14 = vsyncpa [#allocation4 + $0x1], 0  ;;  %s559_s15 = smov 0   ;;  %s561_s16 = smov 0  }
   0x4   :  { %s563_s17 = smov 0   ;;  %s565_s18 = smov 0  }
   0x5 LB: > { %s580_s19 = sadd.s32 4294967295, %s528_s18   ;;  %s365_s20 = sadd.s32 4294967294, %s528_s18   ;;  %s528_s18 = sphi %s565_s18, %s734_s18   ;;  %s524_s17 = sphi %s563_s17, %s733_s17   ;;  %s520_s16 = sphi %s561_s16, %s732_s16   ;;  %s516_s15 = sphi %s559_s15, %s731_s15  }
   0x6   : > { %s584_s21 = sadd.s32 1, %s528_s18   ;;  %s27_s22 = sadd.s32 1, %s524_s17 }
   0x7   : > { %s24_s23 = ssub.s32 %s528_s18, %s584_s21  ;;  %p34_p0 = scmp.ne.s32.totalorder %s524_s17, %s520_s16 }
   0x8   : > { %p25_p1 = scmp.eq.s32.totalorder %s24_s23, 0  ;;  %p35_p2 = scmp.eq.s32.totalorder %s528_s18, 0 }
   0x9   : > { %p40_p3 = scmp.ne.s32.totalorder %s520_s16, %s516_s15  ;;  %p41_p4 = scmp.eq.s32.totalorder %s580_s19, 0 }
   0xa   : > { %s596_s24 = scalar_select %p25_p1, %s524_s17, %s27_s22  }
   0xb   : > { %p598_p5 = por %p35_p2, %p34_p0  ;;  %p602_p6 = por %p41_p4, %p40_p3 }
   0xc   : > { %p127_p7 = scmp.eq.s32.totalorder %s580_s19, 1  ;;  %p133_p8 = scmp.eq.s32.totalorder %s365_s20, 1 }
   0xd   : > { %s721_s26 = scalar_select %p602_p6, 1, 0 }
   0xe   : > { %p393_p10 = scmp.lt.s32.totalorder %s528_s18, 2  ;;  %p609_p11 = por %p127_p7, %p34_p0 }
   0xf   : > { %p613_p12 = por %p133_p8, %p40_p3  ;;  %s162_s29 = sand.u32 1, %s524_s17  }
  0x10   : > { %s722_s27 = scalar_select %p609_p11, 1, 0 }
  0x11   : > { %s723_s28 = scalar_select %p613_p12, 1, 0 }
  0x12   : > { %s379_s30 = sshll.u32 %s528_s18, 7  ;;  %s368_s5 = sshll.u32 %s162_s29, 3 }
  0x13   : > { %s622_s8 = scalar_lea.hbm %s713_s0, %s379_s30  ;;  %s166_s9 = scalar_lea.vmem [#allocation2], %s368_s5 }
  0x14   : > { %s174_s10 = sshll.u32 %s166_s9, 4  ;;  %p626_p13 = pnand %p393_p10, %p598_p5  ;;  %s630_s10 = int_to_ptr.vmem [resolvable:$true] %s174_s10 }
  0x15   : > { %s163_s12 = scalar_lea.sflag [#allocation3], %s162_s29  ;;  %s436_s13 = scalar_lea.hbm %s622_s8, 128 }
  0x16   : > { %p437_p2 = scmp.ne.s32.totalorder %s622_s8, %s436_s13  ;;  %p438_p3 = pneg %p626_p13 }
  0x17   : > { %s441_s22 = scalar_lea.hbm %s713_s0, 256  ;;  %p442_p5 = scmp.lt.s32.totalorder %s622_s8, %s713_s0 }
  0x18   : > { %p439_p4 = pnand %p438_p3, %p437_p2  ;;  %p443_p8 = scmp.lt.s32.totalorder %s441_s22, %s436_s13 }
  0x1a   : > { %p440_p7 = pneg %p439_p4  ;;  %p444_p10 = por %p443_p8, %p442_p5 }
  0x1c   : > { %p445_p9 = pnand %p444_p10, %p440_p7 }
  0x1e   : > { %448 = shalt.err (!%p445_p9)
}
  0x1f   : > { %s449_s29 = scalar_lea.vmem %s630_s10, 128  ;;  %s530_s30 = smov [#allocation2]  }
  0x20   : > { %p450_p0 = scmp.ne.s32.totalorder %s630_s10, %s449_s29  ;;  %s454_s5 = sshll.u32 %s530_s30, 4  ;;  %s455_s5 = int_to_ptr.vmem [resolvable:$false] %s454_s5 }
  0x21   : > { %s456_s6 = scalar_lea.vmem %s455_s5, 256  ;;  %p457_p4 = scmp.lt.s32.totalorder %s630_s10, %s455_s5 }
  0x22   : > { %p452_p1 = pnand %p450_p0, %p438_p3  ;;  %p458_p12 = scmp.lt.s32.totalorder %s456_s6, %s449_s29 }
  0x24   : > { %p453_p2 = pneg %p452_p1  ;;  %p459_p11 = por %p458_p12, %p457_p4 }
  0x26   : > { %p460_p6 = pnand %p459_p11, %p453_p2 }
  0x28   : > { %463 = shalt.err (!%p460_p6)
}
  0x29   : > { %388 = dma.hbm_to_vmem [thread:$0]  (!%p626_p13), %s622_s8, 128, %s630_s10, %s163_s12  }
  0x2a   : > { %p725_p9 = scmp.lt.s32.totalorder %s528_s18, 3  ;;  %p726_p7 = scmp.ge.s32.totalorder %s528_s18, 1 }
  0x2c   : > { %p180_p0 = pnand %p726_p7, %p725_p9 }
  0x2d   : > { %s657_s7 = sand.u32 (!%p180_p0), 1, %s520_s16   ;;  %p727_p6 = scmp.ne.s32.totalorder (!%p180_p0), %s721_s26, 0 }
  0x2e   : > { %183 = sbr.rel (%p180_p0) target bundleno = 522 (0x20a), region = 36  ;;  %s372_s9 = sshll.u32 (!%p180_p0), %s657_s7, 3 }
  0x2f   : > { %s186_s13 = scalar_lea.sflag (!%p180_p0), [#allocation3], %s657_s7  ;;  %s189_s11 = scalar_lea.vmem (!%p180_p0), [#allocation2], %s372_s9 }
  0x33   : > { %507 = dma.done.wait (%p727_p6), %s186_s13, 128  }
  0x34   : > { %509 = vsyncadd (%p727_p6), %s186_s13, 4294967168  ;;  %vm218_vm0 = vcmask 1043456   ;;  %v214_v0 = vld [vmem:[%s189_s11] sm:$0xff]  ;;  %v231_v8 = vlaneseq  ;;  %vm254_vm1 = vcmask 27648   ;;  %v531_v22 = vmov 0   ;;  %s380_s22 = sshll.u32 %s580_s19, 7 }
  0x35   : > { %v216_v1 = vcombine.high %v214_v0, %v214_v0  ;;  %v219_v2 = vsel %vm218_vm0, %v214_v0, 0.0  ;;  %v224_v4 = vsel %vm218_vm0, %v214_v0, -inf  ;;  %v229_v14 = vld [vmem:[%s714_s1] sm:$0xf]  ;;  %429 = vset.pattern.permute.xlu1 %v531_v22  ;;  %430 = vset.pattern.permute.xlu0 %v531_v22  ;;  %v532_v31 = vmov 839922192   ;;  %s293_s5 = scalar_lea.hbm %s717_s4, %s380_s22 }
  0x36   : > { %v232_v9 = vand.u32 127, %v231_v8  ;;  %v234_v10 = vshrl.u32 %v231_v8, 7  ;;  %v243_v15 = vld [vmem:[%s715_s2] sm:$0xf]  ;;  %v271_v32 = vunpack.c.l.s4 %v532_v31  ;;  %s213_s23 = scalar_lea.vmem [#allocation5], %s372_s9  ;;  %s281_s6 = scalar_lea.sflag [#allocation4], %s657_s7 }
  0x37   : > { %v220_v3 = vsel %vm218_vm0, %v216_v1, 0.0  ;;  %v225_v5 = vsel %vm218_vm0, %v216_v1, -inf  ;;  %v258_v23 = vld [vmem:[%s716_s3] sm:$0xf]  ;;  %s295_s25 = sshll.u32 %s213_s23, 4  ;;  %p728_p12 = scmp.ne.s32.totalorder %s722_s27, 0  ;;  %s296_s25 = int_to_ptr.vmem [resolvable:$true] %s295_s25 }
  0x38   : > { %v221_v6 = vadd.f32 %v220_v3, %v219_v2  ;;  %v226_v7 = vmax.f32 %v224_v4, %v225_v5  ;;  %v235_v11 = vsub.s32 %v232_v9, %v234_v10  ;;  %v272_v33 = vunpack.c.0.s8 %v271_v32  ;;  %s464_s13 = scalar_lea.vmem %s296_s25, 128  ;;  %s533_s11 = smov [#allocation5]  }
  0x39   : > { %p465_p11 = scmp.ne.s32.totalorder %s296_s25, %s464_s13  ;;  %s468_s8 = sshll.u32 %s533_s11, 4  ;;  %s469_s8 = int_to_ptr.vmem [resolvable:$false] %s468_s8 }
  0x3a   : > { %222 = vadd.xlane.f32.xlu0 %v221_v6  ;;  %v275_v34 = vsub.s32 %v272_v33, %v234_v10  ;;  %s470_s19 = scalar_lea.vmem %s469_s8, 256  ;;  %p471_p3 = scmp.lt.s32.totalorder %s296_s25, %s469_s8 }
  0x3b   : > { %p466_p13 = pnand %p465_p11, %p728_p12  ;;  %p472_p5 = scmp.lt.s32.totalorder %s470_s19, %s464_s13 }
  0x3d   : > { %p467_p1 = pneg %p466_p13  ;;  %p473_p8 = por %p472_p5, %p471_p3 }
  0x3e   : > { %227 = vmax.xlane.f32.xlu0 %v226_v7 }
  0x3f   : > { %p474_p10 = pnand %p473_p8, %p467_p1 }
  0xc3   : > { %v223_v12 = vpop.xlane.xlu0 %222 }
  0xc4   : > { %v236_v13 = vrot.slane %v223_v12, %v235_v11 }
  0xc6   : > { %v242_v18 = vmul.f32 %v236_v13, %v229_v14 }
  0xc7   : > { %v228_v16 = vpop.xlane.xlu0 %227 }
  0xc8   : > { %v248_v17 = vrot.slane %v228_v16, %v235_v11 }
  0xca   : > { %v252_v19 = vmul.f32 %v248_v17, %v243_v15 }
  0xcc   : > { %v253_v20 = vadd.f32 %v252_v19, %v242_v18 }
  0xce   : > { %v255_v21 = vsel %vm254_vm1, %v253_v20, 0.0 }
  0xcf   : > { %256 = vadd.xlane.f32.xlu1 %v255_v21 }
 0x158   : > { %v257_v24 = vpop.xlane.xlu1 %256 }
 0x159   : > { %v259_v25 = vadd.f32 %v258_v23, %v257_v24 }
 0x15b   : > { %v260_v26 = vsub.f32 0.0, %v259_v25 }
 0x15d   : > { %v261_v27 = vmul.f32 1.442695, %v260_v26 }
 0x15f   : > { %432 = vpow2.f32 %v261_v27 }
 0x16c   : > { %v433_v28 = vpop.eup %432 }
 0x16d   : > { %v263_v29 = vadd.f32 1.0, %v433_v28 }
 0x16f   : > { %434 = vrcp.f32 %v263_v29 }
 0x17c   : > { %v435_v30 = vpop.eup %434 }
 0x17d   : > { %268 = vperm.xlu1 %429, %v435_v30  }
 0x1f8   : > { %v269_v35 = vpop.permute.xlu1 %268 }
 0x1f9   : > { %v276_v36 = vrot.slane %v269_v35, %v275_v34 }
 0x1fb   : > { %v278_v37 = vmul.f32 %v276_v36, %v214_v0 }
 0x1fd   : > { %279 = vst [vmem:[%s213_s23] sm:$0xff] %v278_v37 }
 0x1fe   : > { %477 = shalt.err (!%p474_p10)
}
 0x1ff   : > { %s478_s9 = scalar_lea.hbm %s293_s5, 128  ;;  %s482_s10 = scalar_lea.hbm %s717_s4, 256 }
 0x200   : > { %p479_p2 = scmp.ne.s32.totalorder %s293_s5, %s478_s9  ;;  %p483_p7 = scmp.lt.s32.totalorder %s293_s5, %s717_s4 }
 0x201   : > { %p484_p0 = scmp.lt.s32.totalorder %s482_s10, %s478_s9 }
 0x202   : > { %p480_p4 = pnand %p479_p2, %p728_p12 }
 0x203   : > { %p485_p6 = por %p484_p0, %p483_p7 }
 0x204   : > { %p481_p9 = pneg %p480_p4 }
 0x206   : > { %p486_p11 = pnand %p485_p6, %p481_p9 }
 0x208   : > { %489 = shalt.err (!%p486_p11)
}
 0x209   : > { %383 = dma.vmem_to_hbm [thread:$0]  (%p728_p12), %s296_s25, 128, %s293_s5, %s281_s6  }
 0x20a PF: > { %s307_s20 = sand.u32 1, %s516_s15   ;;  %p729_p13 = scmp.ne.s32.totalorder %s723_s28, 0 }
 0x20b   : > { %p730_p1 = scmp.ge.s32.totalorder %s528_s18, 2  ;;  %s308_s22 = scalar_lea.sflag [#allocation4], %s307_s20 }
 0x20d   : > { %p390_p3 = pnand %p730_p1, %p729_p13 }
 0x20f   : > { %p391_p5 = pneg %p390_p3 }
 0x211   : > { %511 = dma.done.wait (%p391_p5), %s308_s22, 128  }
 0x212   : > { %513 = vsyncadd (%p391_p5), %s308_s22, 4294967168  ;;  %p17_p8 = scmp.ge.s32.totalorder %s584_s21, 4   ;;  %s731_s15 = smov %s520_s16 }
 0x213   : > { %s732_s16 = smov %s524_s17  ;;  %s733_s17 = smov %s596_s24 }
 0x214   : > { %s734_s18 = smov %s584_s21  ;;  %19 = sbr.rel (!%p17_p8) target bundleno = 5 (0x5), region = 81 }
 0x219   :  { %313 = vsyncpa [#allocation3], 1 }
 0x21a   :  { %315 = vsyncpa [#allocation3 + $0x1], 1 }
 0x21b   :  { %316 = vsyncpa [#allocation4], 1 }
 0x21c   :  { %318 = vsyncpa [#allocation4 + $0x1], 1 }

</bundles_post_ra>
